<compile_context>
chip_gen: v7x
topology: tpu7x:2x2x1
jax: 0.10.0
libtpu: 0.0.40
codegen_flags: <defaults>
</compile_context>

<pallas_src>
import functools

import jax
import jax.numpy as jnp
from jax.experimental import pallas as pl
from jax.experimental.pallas import tpu as pltpu

# ----------------------------- configuration --------------------------------
SEQ = 8            # sequence length
BATCH = 2
DIM = 32           # d_model
HEADS = 4          # n_head
DIM_HEAD = DIM // HEADS      # 8
MLP_DIM = 4 * DIM            # 128
LN_EPS = 1e-5
NEG_INF = -1e9


# ----------------------------- Pallas kernel ---------------------------------


def _block_kernel(x_ref, hmask_ref, amask_ref,
                  g1_ref, beta1_ref,
                  wqkv_ref, bqkv_ref,
                  wo_ref, bo_ref,
                  g2_ref, beta2_ref,
                  w1_ref, b1_ref, w2_ref, b2_ref,
                  o_ref, *, heads):
    x = x_ref[...]                                 # (R, D) f32, R = L*N rows
    R, D = x.shape

    def layer_norm(t, g, b):
        # two-pass statistics (biased var), matches torch.nn.LayerNorm
        mu = jnp.mean(t, axis=-1, keepdims=True)
        c = t - mu
        var = jnp.mean(c * c, axis=-1, keepdims=True)
        return c * jax.lax.rsqrt(var + LN_EPS) * g + b

    def mxu(a_bf16, w_ref, b_ref):
        # bf16 operands, f32 accumulation on the MXU
        return jnp.dot(a_bf16, w_ref[...],
                       preferred_element_type=jnp.float32) + b_ref[...]

    # ---------------- pre-LN multi-head self-attention ----------------
    xn = layer_norm(x, g1_ref[...], beta1_ref[...]).astype(jnp.bfloat16)
    qkv = mxu(xn, wqkv_ref, bqkv_ref)              # (R, 3D) f32 (scale in q part)
    q = qkv[:, :D]                                 # f32
    k = qkv[:, D:2 * D].astype(jnp.bfloat16)       # (R, D)
    v = qkv[:, 2 * D:].astype(jnp.bfloat16)        # (R, D)

    hmask = hmask_ref[...]                         # (H, D) head-column selector
    qm = (q[None, :, :] * hmask[:, None, :]).astype(jnp.bfloat16)   # (H, R, D)
    qm2 = qm.reshape(heads * R, D)                 # layout-preserving merge

    # block-diagonal batched attention over flattened (L*N) rows:
    # the additive batch mask zeroes cross-batch probabilities.
    s = jnp.dot(qm2, k.T, preferred_element_type=jnp.float32)       # (H*R, R)
    s = s.reshape(heads, R, R) + amask_ref[...][None, :, :]
    m = jnp.max(s, axis=-1, keepdims=True)
    e = jnp.exp(s - m)
    p = e * pl.reciprocal(jnp.sum(e, axis=-1, keepdims=True), approx=True)

    ctx_h = jnp.dot(p.reshape(heads * R, R).astype(jnp.bfloat16), v,
                    preferred_element_type=jnp.float32)             # (H*R, D)
    ctx_h = ctx_h.reshape(heads, R, D)
    # head mask applied AFTER the P.V matmul (acts on the non-contracted dim)
    ctx = jnp.sum(ctx_h * hmask[:, None, :], axis=0)                # (R, D)

    x = x + mxu(ctx.astype(jnp.bfloat16), wo_ref, bo_ref)           # residual 1

    # ---------------- pre-LN MLP with QuickGELU ----------------
    xn2 = layer_norm(x, g2_ref[...], beta2_ref[...]).astype(jnp.bfloat16)
    h1 = mxu(xn2, w1_ref, b1_ref)                                   # (R, 4D)
    h1 = (h1 * jax.nn.sigmoid(1.702 * h1)).astype(jnp.bfloat16)     # QuickGELU
    o_ref[...] = x + mxu(h1, w2_ref, b2_ref)                        # residual 2


# ----------------------------- wrapper ----------------------------------------


def residual_attention_block(params, x):
    """x: (L, N, D) float32 (torch nn.MultiheadAttention layout)."""
    L, N, D = x.shape
    rows = L * N
    xf = x.reshape(rows, D)          # contiguous merge -> free, no HBM transpose

    # trace-time constants (tiny, resident in VMEM)
    hmask = (jax.lax.broadcasted_iota(jnp.int32, (HEADS, D), 1) // DIM_HEAD
             == jax.lax.broadcasted_iota(jnp.int32, (HEADS, D), 0)
             ).astype(jnp.float32)                                   # (H, D)
    rid = jnp.arange(rows, dtype=jnp.int32) % N                      # batch of row
    amask = jnp.where(rid[:, None] == rid[None, :], 0.0, NEG_INF
                      ).astype(jnp.float32)                          # (R, R)

    args = (xf, hmask, amask,
            params["ln1_g"], params["ln1_b"],
            params["wqkv"], params["bqkv"],
            params["wo"], params["bo"],
            params["ln2_g"], params["ln2_b"],
            params["w1"], params["b1"], params["w2"], params["b2"])

    vmem = pl.BlockSpec(memory_space=pltpu.MemorySpace.VMEM)
    kernel = functools.partial(_block_kernel, heads=HEADS)
    out = pl.pallas_call(
        kernel,
        out_shape=jax.ShapeDtypeStruct((rows, D), jnp.float32),
        in_specs=[vmem] * len(args),
        out_specs=vmem,
    )(*args)
    return out.reshape(L, N, D)


# ----------------------------- parameters -------------------------------------


def init_params(key):
    ks = jax.random.split(key, 12)
    f32, bf16 = jnp.float32, jnp.bfloat16
    std = 0.02
    scale = DIM_HEAD ** -0.5

    def w(k, shape):
        return jax.random.normal(k, shape, f32) * std

    # softmax scale folded into the query projection (weight AND bias)
    wq = w(ks[0], (DIM, DIM)) * scale
    bq = w(ks[1], (1, DIM)) * scale
    wk = w(ks[2], (DIM, DIM))
    bk = w(ks[3], (1, DIM))
    wv = w(ks[4], (DIM, DIM))
    bv = w(ks[5], (1, DIM))

    return {
        "ln1_g": jnp.ones((1, DIM), f32),
        "ln1_b": jnp.zeros((1, DIM), f32),
        # fused Q|K|V projection
        "wqkv": jnp.concatenate([wq, wk, wv], axis=1).astype(bf16),   # (D, 3D)
        "bqkv": jnp.concatenate([bq, bk, bv], axis=1),                # (1, 3D) f32
        "wo": w(ks[6], (DIM, DIM)).astype(bf16),
        "bo": w(ks[7], (1, DIM)),
        "ln2_g": jnp.ones((1, DIM), f32),
        "ln2_b": jnp.zeros((1, DIM), f32),
        "w1": w(ks[8], (DIM, MLP_DIM)).astype(bf16),
        "b1": w(ks[9], (1, MLP_DIM)),
        "w2": w(ks[10], (MLP_DIM, DIM)).astype(bf16),
        "b2": w(ks[11], (1, DIM)),
    }


def forward(params, x):
    return residual_attention_block(params, x)


# ----------------------------- main --------------------------------------------

if __name__ == "__main__":
    key = jax.random.PRNGKey(0)
    pkey, xkey = jax.random.split(key)
    params = init_params(pkey)
    x = jax.random.normal(xkey, (SEQ, BATCH, DIM), jnp.float32)   # (L, N, D)
    out = jax.jit(forward)(params, x)
    jax.block_until_ready(out)
    assert out.shape == (SEQ, BATCH, DIM), out.shape
    assert out.dtype == jnp.float32
    assert bool(jnp.all(jnp.isfinite(out)))
    print("KERNEL_OK")
</pallas_src>

<mosaic_0001>
module attributes {stable_mosaic.version = 11 : i64} {
  func.func @_block_kernel(%arg0: memref<16x32xf32, #tpu.memory_space<vmem>>, %arg1: memref<4x32xf32, #tpu.memory_space<vmem>>, %arg2: memref<16x16xf32, #tpu.memory_space<vmem>>, %arg3: memref<1x32xf32, #tpu.memory_space<vmem>>, %arg4: memref<1x32xf32, #tpu.memory_space<vmem>>, %arg5: memref<32x96xbf16, #tpu.memory_space<vmem>>, %arg6: memref<1x96xf32, #tpu.memory_space<vmem>>, %arg7: memref<32x32xbf16, #tpu.memory_space<vmem>>, %arg8: memref<1x32xf32, #tpu.memory_space<vmem>>, %arg9: memref<1x32xf32, #tpu.memory_space<vmem>>, %arg10: memref<1x32xf32, #tpu.memory_space<vmem>>, %arg11: memref<32x128xbf16, #tpu.memory_space<vmem>>, %arg12: memref<1x128xf32, #tpu.memory_space<vmem>>, %arg13: memref<128x32xbf16, #tpu.memory_space<vmem>>, %arg14: memref<1x32xf32, #tpu.memory_space<vmem>>, %arg15: memref<16x32xf32, #tpu.memory_space<vmem>>) attributes {dimension_semantics = [], scalar_prefetch = 0 : i64, scratch_operands = 0 : i64, tpu.core_type = #tpu.core_type<tc>} {
    %c0 = arith.constant 0 : index
    %c0_0 = arith.constant 0 : index
    %0 = vector.load %arg0[%c0, %c0_0] : memref<16x32xf32, #tpu.memory_space<vmem>>, vector<16x32xf32>
    %c0_1 = arith.constant 0 : index
    %c0_2 = arith.constant 0 : index
    %1 = vector.load %arg3[%c0_1, %c0_2] : memref<1x32xf32, #tpu.memory_space<vmem>>, vector<1x32xf32>
    %c0_3 = arith.constant 0 : index
    %c0_4 = arith.constant 0 : index
    %2 = vector.load %arg4[%c0_3, %c0_4] : memref<1x32xf32, #tpu.memory_space<vmem>>, vector<1x32xf32>
    %cst = arith.constant dense<0.000000e+00> : vector<16xf32>
    %3 = vector.multi_reduction <add>, %0, %cst [1] : vector<16x32xf32> to vector<16xf32>
    %4 = vector.shape_cast %3 : vector<16xf32> to vector<16x1xf32>
    %cst_5 = arith.constant 3.200000e+01 : f32
    %5 = vector.broadcast %cst_5 : f32 to vector<16x1xf32>
    %6 = arith.divf %4, %5 : vector<16x1xf32>
    %7 = vector.broadcast %6 : vector<16x1xf32> to vector<16x32xf32>
    %8 = arith.subf %0, %7 : vector<16x32xf32>
    %9 = arith.mulf %8, %8 : vector<16x32xf32>
    %cst_6 = arith.constant dense<0.000000e+00> : vector<16xf32>
    %10 = vector.multi_reduction <add>, %9, %cst_6 [1] : vector<16x32xf32> to vector<16xf32>
    %11 = vector.shape_cast %10 : vector<16xf32> to vector<16x1xf32>
    %cst_7 = arith.constant 3.200000e+01 : f32
    %12 = vector.broadcast %cst_7 : f32 to vector<16x1xf32>
    %13 = arith.divf %11, %12 : vector<16x1xf32>
    %cst_8 = arith.constant 9.99999974E-6 : f32
    %14 = vector.broadcast %cst_8 : f32 to vector<16x1xf32>
    %15 = arith.addf %13, %14 : vector<16x1xf32>
    %16 = math.rsqrt %15 : vector<16x1xf32>
    %17 = vector.broadcast %16 : vector<16x1xf32> to vector<16x32xf32>
    %18 = arith.mulf %8, %17 : vector<16x32xf32>
    %19 = vector.broadcast %1 : vector<1x32xf32> to vector<16x32xf32>
    %20 = arith.mulf %18, %19 : vector<16x32xf32>
    %21 = vector.broadcast %2 : vector<1x32xf32> to vector<16x32xf32>
    %22 = arith.addf %20, %21 : vector<16x32xf32>
    %23 = arith.truncf %22 : vector<16x32xf32> to vector<16x32xbf16>
    %c0_9 = arith.constant 0 : index
    %c0_10 = arith.constant 0 : index
    %24 = vector.load %arg5[%c0_9, %c0_10] : memref<32x96xbf16, #tpu.memory_space<vmem>>, vector<32x96xbf16>
    %cst_11 = arith.constant dense<0.000000e+00> : vector<16x96xf32>
    %25 = tpu.matmul %23, %24, %cst_11 {dimension_numbers = #tpu.dot_dimension_numbers<[1], [0], [0], [1], [0, 0, 1, 1], [], []>} : vector<16x32xbf16>, vector<32x96xbf16>, vector<16x96xf32> -> vector<16x96xf32>
    %c0_12 = arith.constant 0 : index
    %c0_13 = arith.constant 0 : index
    %26 = vector.load %arg6[%c0_12, %c0_13] : memref<1x96xf32, #tpu.memory_space<vmem>>, vector<1x96xf32>
    %27 = vector.broadcast %26 : vector<1x96xf32> to vector<16x96xf32>
    %28 = arith.addf %25, %27 : vector<16x96xf32>
    %29 = vector.extract_strided_slice %28 {offsets = [0, 0], sizes = [16, 32], strides = [1, 1]} : vector<16x96xf32> to vector<16x32xf32>
    %30 = vector.extract_strided_slice %28 {offsets = [0, 32], sizes = [16, 32], strides = [1, 1]} : vector<16x96xf32> to vector<16x32xf32>
    %31 = arith.truncf %30 : vector<16x32xf32> to vector<16x32xbf16>
    %32 = vector.extract_strided_slice %28 {offsets = [0, 64], sizes = [16, 32], strides = [1, 1]} : vector<16x96xf32> to vector<16x32xf32>
    %33 = arith.truncf %32 : vector<16x32xf32> to vector<16x32xbf16>
    %c0_14 = arith.constant 0 : index
    %c0_15 = arith.constant 0 : index
    %34 = vector.load %arg1[%c0_14, %c0_15] : memref<4x32xf32, #tpu.memory_space<vmem>>, vector<4x32xf32>
    %35 = vector.shape_cast %29 : vector<16x32xf32> to vector<1x16x32xf32>
    %36 = vector.shape_cast %34 : vector<4x32xf32> to vector<4x1x32xf32>
    %37 = vector.broadcast %35 : vector<1x16x32xf32> to vector<4x16x32xf32>
    %38 = vector.broadcast %36 : vector<4x1x32xf32> to vector<4x16x32xf32>
    %39 = arith.mulf %37, %38 : vector<4x16x32xf32>
    %40 = arith.truncf %39 : vector<4x16x32xf32> to vector<4x16x32xbf16>
    %41 = vector.shape_cast %40 : vector<4x16x32xbf16> to vector<64x32xbf16>
    %42 = tpu.transpose %31, [1, 0] : vector<16x32xbf16> -> vector<32x16xbf16>
    %cst_16 = arith.constant dense<0.000000e+00> : vector<64x16xf32>
    %43 = tpu.matmul %41, %42, %cst_16 {dimension_numbers = #tpu.dot_dimension_numbers<[1], [0], [0], [1], [0, 0, 1, 1], [], []>} : vector<64x32xbf16>, vector<32x16xbf16>, vector<64x16xf32> -> vector<64x16xf32>
    %44 = vector.shape_cast %43 : vector<64x16xf32> to vector<4x16x16xf32>
    %c0_17 = arith.constant 0 : index
    %c0_18 = arith.constant 0 : index
    %45 = vector.load %arg2[%c0_17, %c0_18] : memref<16x16xf32, #tpu.memory_space<vmem>>, vector<16x16xf32>
    %46 = vector.shape_cast %45 : vector<16x16xf32> to vector<1x16x16xf32>
    %47 = vector.broadcast %46 : vector<1x16x16xf32> to vector<4x16x16xf32>
    %48 = arith.addf %44, %47 : vector<4x16x16xf32>
    %cst_19 = arith.constant dense<0xFF800000> : vector<4x16xf32>
    %49 = vector.multi_reduction <maximumf>, %48, %cst_19 [2] : vector<4x16x16xf32> to vector<4x16xf32>
    %50 = vector.shape_cast %49 : vector<4x16xf32> to vector<4x16x1xf32>
    %51 = vector.broadcast %50 : vector<4x16x1xf32> to vector<4x16x16xf32>
    %52 = arith.subf %48, %51 : vector<4x16x16xf32>
    %53 = math.exp %52 : vector<4x16x16xf32>
    %cst_20 = arith.constant dense<0.000000e+00> : vector<4x16xf32>
    %54 = vector.multi_reduction <add>, %53, %cst_20 [2] : vector<4x16x16xf32> to vector<4x16xf32>
    %55 = vector.shape_cast %54 : vector<4x16xf32> to vector<4x16x1xf32>
    %56 = tpu.reciprocal %55 {approx = true} : vector<4x16x1xf32> -> vector<4x16x1xf32>
    %57 = vector.broadcast %56 : vector<4x16x1xf32> to vector<4x16x16xf32>
    %58 = arith.mulf %53, %57 : vector<4x16x16xf32>
    %59 = vector.shape_cast %58 : vector<4x16x16xf32> to vector<64x16xf32>
    %60 = arith.truncf %59 : vector<64x16xf32> to vector<64x16xbf16>
    %cst_21 = arith.constant dense<0.000000e+00> : vector<64x32xf32>
    %61 = tpu.matmul %60, %33, %cst_21 {dimension_numbers = #tpu.dot_dimension_numbers<[1], [0], [0], [1], [0, 0, 1, 1], [], []>} : vector<64x16xbf16>, vector<16x32xbf16>, vector<64x32xf32> -> vector<64x32xf32>
    %62 = vector.shape_cast %61 : vector<64x32xf32> to vector<4x16x32xf32>
    %63 = vector.shape_cast %34 : vector<4x32xf32> to vector<4x1x32xf32>
    %64 = vector.broadcast %63 : vector<4x1x32xf32> to vector<4x16x32xf32>
    %65 = arith.mulf %62, %64 : vector<4x16x32xf32>
    %cst_22 = arith.constant dense<0.000000e+00> : vector<16x32xf32>
    %66 = vector.multi_reduction <add>, %65, %cst_22 [0] : vector<4x16x32xf32> to vector<16x32xf32>
    %67 = arith.truncf %66 : vector<16x32xf32> to vector<16x32xbf16>
    %c0_23 = arith.constant 0 : index
    %c0_24 = arith.constant 0 : index
    %68 = vector.load %arg7[%c0_23, %c0_24] : memref<32x32xbf16, #tpu.memory_space<vmem>>, vector<32x32xbf16>
    %cst_25 = arith.constant dense<0.000000e+00> : vector<16x32xf32>
    %69 = tpu.matmul %67, %68, %cst_25 {dimension_numbers = #tpu.dot_dimension_numbers<[1], [0], [0], [1], [0, 0, 1, 1], [], []>} : vector<16x32xbf16>, vector<32x32xbf16>, vector<16x32xf32> -> vector<16x32xf32>
    %c0_26 = arith.constant 0 : index
    %c0_27 = arith.constant 0 : index
    %70 = vector.load %arg8[%c0_26, %c0_27] : memref<1x32xf32, #tpu.memory_space<vmem>>, vector<1x32xf32>
    %71 = vector.broadcast %70 : vector<1x32xf32> to vector<16x32xf32>
    %72 = arith.addf %69, %71 : vector<16x32xf32>
    %73 = arith.addf %0, %72 : vector<16x32xf32>
    %c0_28 = arith.constant 0 : index
    %c0_29 = arith.constant 0 : index
    %74 = vector.load %arg9[%c0_28, %c0_29] : memref<1x32xf32, #tpu.memory_space<vmem>>, vector<1x32xf32>
    %c0_30 = arith.constant 0 : index
    %c0_31 = arith.constant 0 : index
    %75 = vector.load %arg10[%c0_30, %c0_31] : memref<1x32xf32, #tpu.memory_space<vmem>>, vector<1x32xf32>
    %cst_32 = arith.constant dense<0.000000e+00> : vector<16xf32>
    %76 = vector.multi_reduction <add>, %73, %cst_32 [1] : vector<16x32xf32> to vector<16xf32>
    %77 = vector.shape_cast %76 : vector<16xf32> to vector<16x1xf32>
    %cst_33 = arith.constant 3.200000e+01 : f32
    %78 = vector.broadcast %cst_33 : f32 to vector<16x1xf32>
    %79 = arith.divf %77, %78 : vector<16x1xf32>
    %80 = vector.broadcast %79 : vector<16x1xf32> to vector<16x32xf32>
    %81 = arith.subf %73, %80 : vector<16x32xf32>
    %82 = arith.mulf %81, %81 : vector<16x32xf32>
    %cst_34 = arith.constant dense<0.000000e+00> : vector<16xf32>
    %83 = vector.multi_reduction <add>, %82, %cst_34 [1] : vector<16x32xf32> to vector<16xf32>
    %84 = vector.shape_cast %83 : vector<16xf32> to vector<16x1xf32>
    %cst_35 = arith.constant 3.200000e+01 : f32
    %85 = vector.broadcast %cst_35 : f32 to vector<16x1xf32>
    %86 = arith.divf %84, %85 : vector<16x1xf32>
    %cst_36 = arith.constant 9.99999974E-6 : f32
    %87 = vector.broadcast %cst_36 : f32 to vector<16x1xf32>
    %88 = arith.addf %86, %87 : vector<16x1xf32>
    %89 = math.rsqrt %88 : vector<16x1xf32>
    %90 = vector.broadcast %89 : vector<16x1xf32> to vector<16x32xf32>
    %91 = arith.mulf %81, %90 : vector<16x32xf32>
    %92 = vector.broadcast %74 : vector<1x32xf32> to vector<16x32xf32>
    %93 = arith.mulf %91, %92 : vector<16x32xf32>
    %94 = vector.broadcast %75 : vector<1x32xf32> to vector<16x32xf32>
    %95 = arith.addf %93, %94 : vector<16x32xf32>
    %96 = arith.truncf %95 : vector<16x32xf32> to vector<16x32xbf16>
    %c0_37 = arith.constant 0 : index
    %c0_38 = arith.constant 0 : index
    %97 = vector.load %arg11[%c0_37, %c0_38] : memref<32x128xbf16, #tpu.memory_space<vmem>>, vector<32x128xbf16>
    %cst_39 = arith.constant dense<0.000000e+00> : vector<16x128xf32>
    %98 = tpu.matmul %96, %97, %cst_39 {dimension_numbers = #tpu.dot_dimension_numbers<[1], [0], [0], [1], [0, 0, 1, 1], [], []>} : vector<16x32xbf16>, vector<32x128xbf16>, vector<16x128xf32> -> vector<16x128xf32>
    %c0_40 = arith.constant 0 : index
    %c0_41 = arith.constant 0 : index
    %99 = vector.load %arg12[%c0_40, %c0_41] : memref<1x128xf32, #tpu.memory_space<vmem>>, vector<1x128xf32>
    %100 = vector.broadcast %99 : vector<1x128xf32> to vector<16x128xf32>
    %101 = arith.addf %98, %100 : vector<16x128xf32>
    %cst_42 = arith.constant 1.702000e+00 : f32
    %102 = vector.broadcast %cst_42 : f32 to vector<16x128xf32>
    %103 = arith.mulf %102, %101 : vector<16x128xf32>
    %104 = arith.negf %103 : vector<16x128xf32>
    %105 = math.exp %104 : vector<16x128xf32>
    %cst_43 = arith.constant 1.000000e+00 : f32
    %106 = vector.broadcast %cst_43 : f32 to vector<16x128xf32>
    %107 = arith.addf %106, %105 : vector<16x128xf32>
    %108 = arith.divf %106, %107 : vector<16x128xf32>
    %109 = arith.mulf %101, %108 : vector<16x128xf32>
    %110 = arith.truncf %109 : vector<16x128xf32> to vector<16x128xbf16>
    %c0_44 = arith.constant 0 : index
    %c0_45 = arith.constant 0 : index
    %111 = vector.load %arg13[%c0_44, %c0_45] : memref<128x32xbf16, #tpu.memory_space<vmem>>, vector<128x32xbf16>
    %cst_46 = arith.constant dense<0.000000e+00> : vector<16x32xf32>
    %112 = tpu.matmul %110, %111, %cst_46 {dimension_numbers = #tpu.dot_dimension_numbers<[1], [0], [0], [1], [0, 0, 1, 1], [], []>} : vector<16x128xbf16>, vector<128x32xbf16>, vector<16x32xf32> -> vector<16x32xf32>
    %c0_47 = arith.constant 0 : index
    %c0_48 = arith.constant 0 : index
    %113 = vector.load %arg14[%c0_47, %c0_48] : memref<1x32xf32, #tpu.memory_space<vmem>>, vector<1x32xf32>
    %114 = vector.broadcast %113 : vector<1x32xf32> to vector<16x32xf32>
    %115 = arith.addf %112, %114 : vector<16x32xf32>
    %116 = arith.addf %73, %115 : vector<16x32xf32>
    %c0_49 = arith.constant 0 : index
    %c0_50 = arith.constant 0 : index
    %117 = vector.load %arg15[%c0_49, %c0_50] : memref<16x32xf32, #tpu.memory_space<vmem>>, vector<16x32xf32>
    tpu.vector_store %arg15[%c0_49, %c0_50], %116 {strides = array<i32>} : memref<16x32xf32, #tpu.memory_space<vmem>>, vector<16x32xf32>,
    return
  }
}

</mosaic_0001>

<bundles_post_ra>
// kernel: forward.1
= control target key start
LH: loop header
LB: loop body
LE: loop exit
PB: predicated region body
PF: predicated region fallthrough
CT: control target
= control target key end

     0   :  { %vm56_vm0 = vcmask 261120   ;;  %s1371_s0 = inlined_call_operand.vmem [shape: f32[16,32], index: 0, kind: input, shape index: {}]   ;;  %s1372_s1 = inlined_call_operand.vmem [shape: f32[4,32], index: 1, kind: input, shape index: {}]   ;;  %s1373_s2 = inlined_call_operand.vmem [shape: f32[16,16], index: 2, kind: input, shape index: {}]   ;;  %s1374_s3 = inlined_call_operand.vmem [shape: f32[1,32], index: 3, kind: input, shape index: {}]   ;;  %s1375_s4 = inlined_call_operand.vmem [shape: f32[1,32], index: 4, kind: input, shape index: {}]   ;;  %s1376_s5 = inlined_call_operand.vmem [shape: bf16[32,96], index: 5, kind: input, shape index: {}]   ;;  %s1377_s6 = inlined_call_operand.vmem [shape: f32[1,96], index: 6, kind: input, shape index: {}]   ;;  %s1378_s7 = inlined_call_operand.vmem [shape: bf16[32,32], index: 7, kind: input, shape index: {}]   ;;  %s1379_s8 = inlined_call_operand.vmem [shape: f32[1,32], index: 8, kind: input, shape index: {}]   ;;  %s1380_s9 = inlined_call_operand.vmem [shape: f32[1,32], index: 9, kind: input, shape index: {}]   ;;  %s1381_s10 = inlined_call_operand.vmem [shape: f32[1,32], index: 10, kind: input, shape index: {}]   ;;  %s1382_s11 = inlined_call_operand.vmem [shape: bf16[32,128], index: 11, kind: input, shape index: {}]   ;;  %s1383_s12 = inlined_call_operand.vmem [shape: f32[1,128], index: 12, kind: input, shape index: {}]   ;;  %s1384_s13 = inlined_call_operand.vmem [shape: bf16[128,32], index: 13, kind: input, shape index: {}]   ;;  %s1385_s14 = inlined_call_operand.vmem [shape: f32[1,32], index: 14, kind: input, shape index: {}]   ;;  %s1386_s15 = inlined_call_operand.hbm [shape: f32[16,32], index: 15, kind: output, shape index: {}]  }
   0x1   :  { %v1160_v0 = vld [vmem:[%s1371_s0] sm:$0xff]  ;;  %v1165_v1 = vld [vmem:[%s1371_s0 + $0x8] sm:$0xff] }
   0x2   :  { %v57_v2 = vsel %vm56_vm0, %v1160_v0, 0.0  ;;  %v60_v3 = vsel %vm56_vm0, %v1165_v1, 0.0 }
   0x3   :  { %58 = vadd.xlane.f32.xlu0 %v57_v2 }
   0x7   :  { %61 = vadd.xlane.f32.xlu0 %v60_v3 }
   0x8   :  { %20 = vsyncpa [#allocation3], 0  ;;  %v983_v14 = vld [vmem:[%s1376_s5] sm:$0xff]   ;;  %v1069_v15 = vmov 0.0   ;;  %v984_v16 = vld [vmem:[%s1376_s5 + $0x8] sm:$0xff]   ;;  %vm1070_vm1 = vmmov 0   ;;  %v182_v36 = vlaneseq }
   0x9   :  { %910 = vmatprep.subr.bf16.mxu0 %v1069_v15  ;;  %914 = vmatprep.mubr.msk.bf16.mxu0 %vm1070_vm1, %v1069_v15  ;;  %v846_v25 = vld [vmem:[%s1374_s3] ss:$0 sm:$0xff]  ;;  %v1071_v34 = vmov 1966171168   ;;  %vm320_vm2 = vcmask 130048   ;;  %s1074_s0 = smov [#allocation2]  }
   0xa   :  { %911 = vmatpush3.bf16.msra.mxu0 %v983_v14  ;;  %v847_v29 = vld [vmem:[%s1375_s4] ss:$0 sm:$0xff]  ;;  %v180_v35 = vunpack.c.l.s4 %v1071_v34  ;;  %v183_v38 = vshrl.u32 %v182_v36, 7 }
   0xb   :  { %912 = vmatprep.subr.bf16.mxu0 %v1069_v15  ;;  %v852_v39 = vld.sshfl [vmem:[%s1372_s1] sm:$0x33 pattern:$0x75316420]  ;;  %s1072_s1 = smov 96  }
   0xc   :  { %v181_v37 = vunpack.c.0.s8 %v180_v35  ;;  %v178_v40 = vcombine.high %v852_v39, %v852_v39  ;;  %v197_v45 = vsub.s32 0, %v183_v38  ;;  %v848_v50 = vld [vmem:[%s1377_s6] ss:$0 sm:$0xff] }
   0xe   :  { %913 = vmatpush3.bf16.msra.mxu0 %v984_v16  ;;  %v184_v41 = vsub.s32 %v181_v37, %v183_v38 }
  0x10   :  { %v185_v42 = vrot.slane %v852_v39, %v184_v41  ;;  %v192_v43 = vrot.slane %v178_v40, %v184_v41 }
  0x12   :  { %v193_v44 = vcombine.high %v185_v42, %v185_v42  ;;  %v194_v46 = vcombine.high %v192_v43, %v192_v43  ;;  %v1195_v47 = vrot.slane %v192_v43, %v197_v45  ;;  %v1204_v52 = vrot.slane %v185_v42, %v197_v45 }
  0x14   :  { %v1197_v48 = vrot.slane %v193_v44, %v197_v45  ;;  %v1199_v49 = vrot.slane %v194_v46, %v197_v45 }
  0x90   :  { %v59_v4 = vpop.xlane.xlu0 %58 }
  0x91   :  { %v64_v5 = vmul.f32 0.03125, %v59_v4 }
  0x93   :  { %v66_v6 = vsub.f32 %v1160_v0, %v64_v5 }
  0x94   :  { %v62_v7 = vpop.xlane.xlu0 %61 }
  0x95   :  { %v65_v8 = vmul.f32 0.03125, %v62_v7  ;;  %v68_v9 = vmul.f32 %v66_v6, %v66_v6 }
  0x97   :  { %v67_v10 = vsub.f32 %v1165_v1, %v65_v8  ;;  %v70_v11 = vsel %vm56_vm0, %v68_v9, 0.0 }
  0x98   :  { %71 = vadd.xlane.f32.xlu1 %v70_v11  ;;  %v310_v11 = vld [vmem:[%s1373_s2] sm:$0xff] }
  0x99   :  { %v69_v12 = vmul.f32 %v67_v10, %v67_v10 }
  0x9b   :  { %v73_v13 = vsel %vm56_vm0, %v69_v12, 0.0 }
  0x9c   :  { %74 = vadd.xlane.f32.xlu1 %v73_v13 }
 0x125   :  { %v72_v17 = vpop.xlane.xlu1 %71 }
 0x126   :  { %v76_v18 = vmul.f32 0.03125, %v72_v17 }
 0x128   :  { %v78_v19 = vadd.f32 1e-05, %v76_v18 }
 0x129   :  { %v75_v20 = vpop.xlane.xlu1 %74 }
 0x12a   :  { %997 = vrsqrt.f32 %v78_v19  ;;  %v77_v21 = vmul.f32 0.03125, %v75_v20  ;;  %v311_v20 = vld [vmem:[%s1373_s2 + $0x8] sm:$0xff]  ;;  %s1073_s2 = smov 64  }
 0x12c   :  { %v79_v22 = vadd.f32 1e-05, %v77_v21 }
 0x12e   :  { %999 = vrsqrt.f32 %v79_v22 }
 0x134   :  { %v998_v23 = vpop.eup %997 }
 0x135   :  { %v82_v24 = vmul.f32 %v998_v23, %v66_v6 }
 0x137   :  { %v90_v28 = vmul.f32 %v846_v25, %v82_v24 }
 0x138   :  { %v1000_v26 = vpop.eup %999 }
 0x139   :  { %v83_v27 = vmul.f32 %v1000_v26, %v67_v10  ;;  %v98_v31 = vadd.f32 %v847_v29, %v90_v28 }
 0x13b   :  { %v91_v30 = vmul.f32 %v846_v25, %v83_v27 }
 0x13d   :  { %v99_v32 = vadd.f32 %v847_v29, %v91_v30 }
 0x13f   :  { %v100_v33 = vpack.c.bf16 %v99_v32, %v98_v31 }
 0x141   :  { %915 = vmatmul.mubr.msk.bf16.vlgmr.msra.gmra.mrb[0].mxu0 %vm56_vm0, %v100_v33 }
 0x214   :  { %v161_v51 = vpop.f32.mrb[0].mxu0 }
 0x215   :  { %v162_v53 = vadd.f32 %v848_v50, %v161_v51  ;;  %v916_v54 = vpop.f32.mrb[1].mxu0 }
 0x216   :  { %v164_v55 = vpop.f32.mrb[2].mxu0 }
 0x217   :  { %v165_v56 = vadd.f32 %v848_v50, %v164_v55  ;;  %v917_v57 = vpop.f32.mrb[3].mxu0  ;;  %v215_v58 = vmul.f32 %v1204_v52, %v162_v53  ;;  %v217_v59 = vmul.f32 %v1195_v47, %v162_v53  ;;  %v219_v60 = vmul.f32 %v1197_v48, %v162_v53 }
 0x218   :  { %v221_v3 = vmul.f32 %v1199_v49, %v162_v53 }
 0x219   :  { %v1209_v61 = vpack.c.bf16 %v165_v56, %v162_v53  ;;  %v216_v62 = vmul.f32 %v1204_v52, %v165_v56  ;;  %v218_v63 = vmul.f32 %v1195_v47, %v165_v56  ;;  %v220_v2 = vmul.f32 %v1197_v48, %v165_v56 }
 0x21a   :  { %v222_v4 = vmul.f32 %v1199_v49, %v165_v56 }
 0x21b   :  { %228 = vrot.lane.b32.xlu0 %v1209_v61, %s1072_s1  ;;  %v223_v5 = vpack.c.bf16 %v216_v62, %v215_v58  ;;  %v224_v6 = vpack.c.bf16 %v218_v63, %v217_v59  ;;  %v225_v7 = vpack.c.bf16 %v220_v2, %v219_v60 }
 0x21c   :  { %v226_v8 = vpack.c.bf16 %v222_v4, %v221_v3 }
 0x21d   :  { %920 = vmatprep.mubr.msk.bf16.mxu1 %vm56_vm0, %v223_v5 }
 0x28d   :  { %v229_v9 = vpop.permute.xlu0 %228 }
 0x28e   :  { %974 = vmatprep.subr.msk.bf16.mxu1 %vm56_vm0, %v229_v9  ;;  %v243_v10 = vsel %vm56_vm0, %v229_v9, 0 }
 0x28f   :  { %919 = vmatpush3.bf16.xpose.msra.mxu1 %v243_v10 }
 0x290   :  { %954 = vmatprep.subr.bf16.mxu1 %v1069_v15 }
 0x296   :  { %921 = vmatmul.mubr.msk.bf16.vlgmr.msra.gmra.mrb[0].mxu1 %vm56_vm0, %v224_v6 }
 0x297   :  { %924 = vmatprep.mubr.msk.bf16.mxu1 %vm56_vm0, %v225_v7 }
 0x29e   :  { %925 = vmatmul.mubr.msk.bf16.gmra.mrb[4].mxu1 %vm56_vm0, %v226_v8 }
 0x29f   :  { %970 = vmatprep.mubr.msk.bf16.mxu1 %vm1070_vm1, %v1069_v15 }
 0x369   :  { %v922_v12 = vpop.f32.mrb[0].mxu1 }
 0x36a   :  { %v314_v13 = vadd.f32 %v922_v12, %v310_v11  ;;  %v279_v14 = vpop.f32.mrb[1].mxu1 }
 0x36b   :  { %v923_v16 = vpop.f32.mrb[2].mxu1  ;;  %v312_v17 = vadd.f32 %v310_v11, %v279_v14 }
 0x36c   :  { %v282_v18 = vpop.f32.mrb[3].mxu1  ;;  %v327_v19 = vsel %vm320_vm2, %v314_v13, -inf  ;;  %v315_v21 = vadd.f32 %v923_v16, %v311_v20 }
 0x36d   :  { %328 = vmax.xlane.f32.xlu1 %v327_v19  ;;  %v321_v22 = vsel %vm320_vm2, %v312_v17, -inf  ;;  %v313_v27 = vadd.f32 %v311_v20, %v282_v18 }
 0x36e   :  { %v330_v29 = vsel %vm320_vm2, %v315_v21, -inf }
 0x36f   :  { %v324_v32 = vsel %vm320_vm2, %v313_v27, -inf }
 0x371   :  { %322 = vmax.xlane.f32.xlu1 %v321_v22  ;;  %v926_v23 = vpop.f32.mrb[4].mxu1 }
 0x372   :  { %v318_v24 = vadd.f32 %v926_v23, %v310_v11  ;;  %v295_v25 = vpop.f32.mrb[5].mxu1 }
 0x373   :  { %v927_v26 = vpop.f32.mrb[6].mxu1  ;;  %v316_v31 = vadd.f32 %v310_v11, %v295_v25 }
 0x374   :  { %v298_v28 = vpop.f32.mrb[7].mxu1  ;;  %v339_v30 = vsel %vm320_vm2, %v318_v24, -inf  ;;  %v319_v35 = vadd.f32 %v927_v26, %v311_v20 }
 0x375   :  { %331 = vmax.xlane.f32.xlu1 %v330_v29  ;;  %340 = vmax.xlane.f32.xlu0 %v339_v30  ;;  %v317_v33 = vadd.f32 %v311_v20, %v298_v28  ;;  %v333_v34 = vsel %vm320_vm2, %v316_v31, -inf }
 0x376   :  { %v342_v37 = vsel %vm320_vm2, %v319_v35, -inf }
 0x377   :  { %v336_v36 = vsel %vm320_vm2, %v317_v33, -inf }
 0x379   :  { %325 = vmax.xlane.f32.xlu1 %v324_v32 }
 0x37d   :  { %334 = vmax.xlane.f32.xlu1 %v333_v34 }
 0x381   :  { %337 = vmax.xlane.f32.xlu1 %v336_v36 }
 0x385   :  { %343 = vmax.xlane.f32.xlu1 %v342_v37 }
 0x3fa   :  { %v329_v38 = vpop.xlane.xlu1 %328 }
 0x3fb   :  { %v347_v39 = vsub.f32 %v314_v13, %v329_v38 }
 0x3fd   :  { %v357_v40 = vmul.f32 1.442695, %v347_v39 }
 0x3fe   :  { %v323_v41 = vpop.xlane.xlu1 %322 }
 0x3ff   :  { %1001 = vpow2.f32 %v357_v40  ;;  %v345_v42 = vsub.f32 %v312_v17, %v323_v41 }
 0x401   :  { %v353_v43 = vmul.f32 1.442695, %v345_v42 }
 0x402   :  { %v332_v44 = vpop.xlane.xlu1 %331  ;;  %v341_v45 = vpop.xlane.xlu0 %340 }
 0x403   :  { %1003 = vpow2.f32 %v353_v43  ;;  %v348_v46 = vsub.f32 %v315_v21, %v332_v44  ;;  %v351_v51 = vsub.f32 %v318_v24, %v341_v45 }
 0x405   :  { %v359_v50 = vmul.f32 1.442695, %v348_v46  ;;  %v365_v56 = vmul.f32 1.442695, %v351_v51 }
 0x406   :  { %v326_v53 = vpop.xlane.xlu1 %325 }
 0x407   :  { %1005 = vpow2.f32 %v359_v50  ;;  %v346_v54 = vsub.f32 %v313_v27, %v326_v53 }
 0x409   :  { %v1240_v55 = vpop.eup %1001  ;;  %v355_v57 = vmul.f32 1.442695, %v346_v54  ;;  %v985_v54 = vld [vmem:[%s1378_s7] sm:$0xff]  }
 0x40a   :  { %v335_v58 = vpop.xlane.xlu1 %334  ;;  %v375_v59 = vsel %vm320_vm2, %v1240_v55, 0.0 }
 0x40b   :  { %1007 = vpow2.f32 %v355_v57  ;;  %v349_v60 = vsub.f32 %v316_v31, %v335_v58  ;;  %376 = vadd.xlane.f32.xlu1 %v375_v59 }
 0x40c   :  { %1009 = vpow2.f32 %v365_v56 }
 0x40d   :  { %v1004_v62 = vpop.eup %1003  ;;  %v361_v63 = vmul.f32 1.442695, %v349_v60 }
 0x40e   :  { %v338_v2 = vpop.xlane.xlu1 %337  ;;  %v369_v3 = vsel %vm320_vm2, %v1004_v62, 0.0 }
 0x40f   :  { %v350_v4 = vsub.f32 %v317_v33, %v338_v2  ;;  %370 = vadd.xlane.f32.xlu1 %v369_v3  ;;  %1011 = vpow2.f32 %v361_v63 }
 0x411   :  { %v1006_v5 = vpop.eup %1005  ;;  %v363_v6 = vmul.f32 1.442695, %v350_v4 }
 0x412   :  { %v344_v7 = vpop.xlane.xlu1 %343  ;;  %v378_v8 = vsel %vm320_vm2, %v1006_v5, 0.0 }
 0x413   :  { %v352_v9 = vsub.f32 %v319_v35, %v344_v7  ;;  %379 = vadd.xlane.f32.xlu1 %v378_v8  ;;  %1013 = vpow2.f32 %v363_v6 }
 0x415   :  { %v1008_v10 = vpop.eup %1007  ;;  %v367_v11 = vmul.f32 1.442695, %v352_v9 }
 0x416   :  { %v372_v12 = vsel %vm320_vm2, %v1008_v10, 0.0  ;;  %v1010_v13 = vpop.eup %1009 }
 0x417   :  { %1015 = vpow2.f32 %v367_v11  ;;  %373 = vadd.xlane.f32.xlu1 %v372_v12  ;;  %v387_v14 = vsel %vm320_vm2, %v1010_v13, 0.0 }
 0x419   :  { %v1012_v16 = vpop.eup %1011 }
 0x41a   :  { %v381_v17 = vsel %vm320_vm2, %v1012_v16, 0.0 }
 0x41b   :  { %388 = vadd.xlane.f32.xlu1 %v387_v14 }
 0x41d   :  { %v1014_v18 = vpop.eup %1013 }
 0x41e   :  { %v384_v20 = vsel %vm320_vm2, %v1014_v18, 0.0 }
 0x41f   :  { %382 = vadd.xlane.f32.xlu1 %v381_v17 }
 0x421   :  { %v1016_v19 = vpop.eup %1015 }
 0x422   :  { %v390_v21 = vsel %vm320_vm2, %v1016_v19, 0.0 }
 0x423   :  { %385 = vadd.xlane.f32.xlu1 %v384_v20  ;;  %391 = vadd.xlane.f32.xlu0 %v390_v21 }
 0x434   :  { %413 = vrot.lane.b32.xlu1 %v1209_v61, %s1073_s2 }
 0x498   :  { %v377_v22 = vpop.xlane.xlu1 %376 }
 0x49c   :  { %v371_v23 = vpop.xlane.xlu1 %370 }
 0x49d   :  { %1017 = vrcp.f32 %v371_v23 }
 0x4a0   :  { %v380_v24 = vpop.xlane.xlu1 %379 }
 0x4a4   :  { %v374_v25 = vpop.xlane.xlu1 %373 }
 0x4a5   :  { %1019 = vrcp.f32 %v374_v25 }
 0x4a6   :  { %1021 = vrcp.f32 %v380_v24 }
 0x4a7   :  { %1023 = vrcp.f32 %v377_v22  ;;  %v1018_v28 = vpop.eup %1017 }
 0x4a8   :  { %v389_v26 = vpop.xlane.xlu1 %388  ;;  %v401_v33 = vmul.f32 %v1018_v28, %v1004_v62 }
 0x4a9   :  { %1025 = vrcp.f32 %v389_v26 }
 0x4ac   :  { %v383_v27 = vpop.xlane.xlu1 %382 }
 0x4ad   :  { %1027 = vrcp.f32 %v383_v27 }
 0x4af   :  { %v1020_v29 = vpop.eup %1019 }
 0x4b0   :  { %v1022_v30 = vpop.eup %1021  ;;  %v392_v31 = vpop.xlane.xlu0 %391  ;;  %v402_v34 = vmul.f32 %v1020_v29, %v1008_v10 }
 0x4b1   :  { %v386_v32 = vpop.xlane.xlu1 %385  ;;  %1029 = vrcp.f32 %v392_v31  ;;  %v1024_v61 = vpop.eup %1023  ;;  %v404_v36 = vmul.f32 %v1022_v30, %v1006_v5 }
 0x4b2   :  { %1031 = vrcp.f32 %v386_v32  ;;  %v409_v35 = vpack.c.bf16 %v402_v34, %v401_v33  ;;  %v403_v38 = vmul.f32 %v1024_v61, %v1240_v55  ;;  %v986_v55 = vld [vmem:[%s1378_s7 + $0x8] sm:$0xff]  }
 0x4b3   :  { %v1026_v40 = vpop.eup %1025 }
 0x4b4   :  { %930 = vmatprep.mubr.msk.bf16.mxu0 %vm320_vm2, %v409_v35  ;;  %v410_v39 = vpack.c.bf16 %v404_v36, %v403_v38  ;;  %v407_v44 = vmul.f32 %v1026_v40, %v1010_v13 }
 0x4b5   :  { %v414_v37 = vpop.permute.xlu1 %413 }
 0x4b6   :  { %928 = vmatprep.subr.bf16.mxu0 %v414_v37 }
 0x4b7   :  { %929 = vmatpush3.bf16.msra.mxu0 %v414_v37  ;;  %v1028_v41 = vpop.eup %1027 }
 0x4b8   :  { %938 = vmatprep.subr.bf16.mxu0 %v1069_v15  ;;  %v405_v46 = vmul.f32 %v1028_v41, %v1012_v16  ;;  %v987_v41 = vld [vmem:[%s1382_s11] sm:$0xff]  }
 0x4ba   :  { %931 = vmatmul.mubr.msk.bf16.vlgmr.msra.gmra.mrb[4].mxu0 %vm320_vm2, %v410_v39 }
 0x4bb   :  { %v1030_v42 = vpop.eup %1029  ;;  %939 = vmatpush3.bf16.msra.mxu0 %v985_v54 }
 0x4bc   :  { %v1032_v43 = vpop.eup %1031  ;;  %v408_v45 = vmul.f32 %v1030_v42, %v1016_v19  ;;  %940 = vmatprep.subr.bf16.mxu0 %v1069_v15  ;;  %v988_v42 = vld [vmem:[%s1382_s11 + $0x8] sm:$0xff]  }
 0x4bd   :  { %v406_v50 = vmul.f32 %v1032_v43, %v1014_v18 }
 0x4be   :  { %v412_v51 = vpack.c.bf16 %v408_v45, %v407_v44 }
 0x4bf   :  { %v411_v53 = vpack.c.bf16 %v406_v50, %v405_v46  ;;  %941 = vmatpush3.bf16.msra.mxu0 %v986_v55  ;;  %v865_v55 = vld [vmem:[%s1380_s9] ss:$0 sm:$0xff] }
 0x4c0   :  { %946 = vmatprep.subr.bf16.mxu0 %v1069_v15 }
 0x4c1   :  { %934 = vmatprep.mubr.msk.bf16.mxu0 %vm320_vm2, %v411_v53 }
 0x4c2   :  { %935 = vmatmul.mubr.msk.bf16.gmra.mrb[8].mxu0 %vm320_vm2, %v412_v51 }
 0x4c3   :  { %942 = vmatprep.mubr.msk.bf16.mxu0 %vm1070_vm1, %v1069_v15 }
 0x58d   :  { %v932_v56 = vpop.f32.mrb[4].mxu0 }
 0x58e   :  { %v495_v57 = vmul.f32 %v932_v56, %v1195_v47  ;;  %v462_v58 = vpop.f32.mrb[5].mxu0 }
 0x58f   :  { %v493_v59 = vmul.f32 %v462_v58, %v1204_v52  ;;  %v933_v60 = vpop.f32.mrb[6].mxu0 }
 0x590   :  { %v502_v62 = vsel %vm56_vm0, %v495_v57, 0.0  ;;  %v496_v63 = vmul.f32 %v933_v60, %v1195_v47  ;;  %v465_v2 = vpop.f32.mrb[7].mxu0 }
 0x591   :  { %v501_v3 = vsel %vm56_vm0, %v493_v59, 0.0  ;;  %v494_v4 = vmul.f32 %v465_v2, %v1204_v52  ;;  %v866_v59 = vld [vmem:[%s1381_s10] ss:$0 sm:$0xff] }
 0x592   :  { %v503_v5 = vadd.f32 %v502_v62, %v501_v3  ;;  %v509_v6 = vsel %vm56_vm0, %v496_v63, 0.0  ;;  %v989_v3 = vld [vmem:[%s1384_s13] sm:$0xff]  }
 0x593   :  { %v508_v7 = vsel %vm56_vm0, %v494_v4, 0.0  ;;  %955 = vmatpush3.bf16.msra.mxu1 %v989_v3  ;;  %v990_v4 = vld [vmem:[%s1384_s13 + $0x8] sm:$0xff]  }
 0x594   :  { %v510_v8 = vadd.f32 %v509_v6, %v508_v7  ;;  %956 = vmatprep.subr.bf16.mxu1 %v1069_v15  ;;  %v992_v6 = vld [vmem:[%s1384_s13 + $0x18] sm:$0xff]   ;;  %v993_v7 = vld [vmem:[%s1384_s13 + $0x20] sm:$0xff]  }
 0x595   :  { %v936_v9 = vpop.f32.mrb[8].mxu0 }
 0x596   :  { %v478_v10 = vpop.f32.mrb[9].mxu0  ;;  %v499_v11 = vmul.f32 %v936_v9, %v1199_v49  ;;  %v995_v9 = vld [vmem:[%s1384_s13 + $0x30] sm:$0xff]  }
 0x597   :  { %v497_v12 = vmul.f32 %v478_v10, %v1197_v48  ;;  %v937_v13 = vpop.f32.mrb[10].mxu0  ;;  %957 = vmatpush3.bf16.msra.mxu1 %v990_v4  ;;  %v996_v10 = vld [vmem:[%s1384_s13 + $0x38] sm:$0xff]  }
 0x598   :  { %v481_v14 = vpop.f32.mrb[11].mxu0  ;;  %v500_v16 = vmul.f32 %v937_v13, %v1199_v49  ;;  %v506_v18 = vsel %vm56_vm0, %v499_v11, 0.0  ;;  %958 = vmatprep.subr.bf16.mxu1 %v1069_v15  ;;  %v867_v11 = vld [vmem:[%s1383_s12] ss:$0 sm:$0xff] }
 0x599   :  { %v504_v47 = vsel %vm56_vm0, %v497_v12, 0.0  ;;  %v498_v52 = vmul.f32 %v481_v14, %v1197_v48  ;;  %v861_v48 = vld [vmem:[%s1379_s8] ss:$0 sm:$0xff]  ;;  %s835_s8 = sshll.u32 %s1074_s0, 4  ;;  %s836_s8 = int_to_ptr.vmem [resolvable:$true] %s835_s8 }
 0x59a   :  { %v505_v17 = vadd.f32 %v504_v47, %v503_v5  ;;  %v513_v22 = vsel %vm56_vm0, %v500_v16, 0.0  ;;  %v991_v5 = vld [vmem:[%s1384_s13 + $0x10] sm:$0xff]   ;;  %s1045_s22 = scalar_lea.vmem %s836_s8, 256  ;;  %p1050_p1 = scmp.lt.s32.totalorder %s836_s8, %s836_s8 }
 0x59b   :  { %v511_v19 = vsel %vm56_vm0, %v498_v52, 0.0  ;;  %959 = vmatpush3.bf16.msra.mxu1 %v991_v5  ;;  %p1046_p0 = scmp.ne.s32.totalorder %s836_s8, %s1045_s22  ;;  %p1051_p2 = scmp.lt.s32.totalorder %s1045_s22, %s1045_s22 }
 0x59c   :  { %v507_v20 = vadd.f32 %v506_v18, %v505_v17  ;;  %v512_v21 = vadd.f32 %v511_v19, %v510_v8  ;;  %960 = vmatprep.subr.bf16.mxu1 %v1069_v15  ;;  %v994_v8 = vld [vmem:[%s1384_s13 + $0x28] sm:$0xff]  }
 0x59d   :  { %p1052_p3 = por %p1051_p2, %p1050_p1 }
 0x59e   :  { %v514_v23 = vadd.f32 %v513_v22, %v512_v21 }
 0x59f   :  { %961 = vmatpush3.bf16.msra.mxu1 %v992_v6  ;;  %p1053_p4 = pnand %p1052_p3, %p1046_p0 }
 0x5a0   :  { %v515_v24 = vpack.c.bf16 %v514_v23, %v507_v20  ;;  %962 = vmatprep.subr.bf16.mxu1 %v1069_v15 }
 0x5a2   :  { %943 = vmatmul.mubr.msk.bf16.vlgmr.msra.gmra.mrb[12].mxu0 %vm56_vm0, %v515_v24 }
 0x5a3   :  { %950 = vmatprep.mubr.msk.bf16.mxu0 %vm1070_vm1, %v1069_v15  ;;  %947 = vmatpush3.bf16.msra.mxu0 %v987_v41 }
 0x5a4   :  { %948 = vmatprep.subr.bf16.mxu0 %v1069_v15  ;;  %963 = vmatpush3.bf16.msra.mxu1 %v993_v7 }
 0x5a5   :  { %964 = vmatprep.subr.bf16.mxu1 %v1069_v15 }
 0x5a7   :  { %949 = vmatpush3.bf16.msra.mxu0 %v988_v42 }
 0x5a8   :  { %965 = vmatpush3.bf16.msra.mxu1 %v994_v8 }
 0x5a9   :  { %966 = vmatprep.subr.bf16.mxu1 %v1069_v15 }
 0x5ac   :  { %967 = vmatpush3.bf16.msra.mxu1 %v995_v9 }
 0x5ad   :  { %968 = vmatprep.subr.bf16.mxu1 %v1069_v15 }
 0x5b0   :  { %969 = vmatpush3.bf16.msra.mxu1 %v996_v10 }
 0x675   :  { %v576_v49 = vpop.f32.mrb[12].mxu0 }
 0x676   :  { %v577_v25 = vadd.f32 %v861_v48, %v576_v49  ;;  %v944_v26 = vpop.f32.mrb[13].mxu0 }
 0x677   :  { %v579_v27 = vpop.f32.mrb[14].mxu0 }
 0x678   :  { %v1291_v28 = vadd.f32 %v577_v25, %v1160_v0  ;;  %v580_v29 = vadd.f32 %v861_v48, %v579_v27  ;;  %v945_v30 = vpop.f32.mrb[15].mxu0  ;;  %v873_v27 = vld [vmem:[%s1385_s14] ss:$0 sm:$0xff] }
 0x67a   :  { %v1294_v31 = vadd.f32 %v580_v29, %v1165_v1  ;;  %v587_v32 = vsel %vm56_vm0, %v1291_v28, 0.0 }
 0x67b   :  { %588 = vadd.xlane.f32.xlu0 %v587_v32 }
 0x67c   :  { %v590_v33 = vsel %vm56_vm0, %v1294_v31, 0.0 }
 0x67f   :  { %591 = vadd.xlane.f32.xlu0 %v590_v33 }
 0x708   :  { %v589_v34 = vpop.xlane.xlu0 %588 }
 0x709   :  { %v593_v61 = vmul.f32 0.03125, %v589_v34 }
 0x70b   :  { %v595_v35 = vsub.f32 %v1291_v28, %v593_v61 }
 0x70c   :  { %v592_v36 = vpop.xlane.xlu0 %591 }
 0x70d   :  { %v594_v0 = vmul.f32 0.03125, %v592_v36  ;;  %v597_v37 = vmul.f32 %v595_v35, %v595_v35 }
 0x70f   :  { %v596_v38 = vsub.f32 %v1294_v31, %v594_v0  ;;  %v599_v1 = vsel %vm56_vm0, %v597_v37, 0.0 }
 0x710   :  { %600 = vadd.xlane.f32.xlu0 %v599_v1 }
 0x711   :  { %v598_v39 = vmul.f32 %v596_v38, %v596_v38 }
 0x713   :  { %v602_v40 = vsel %vm56_vm0, %v598_v39, 0.0 }
 0x714   :  { %603 = vadd.xlane.f32.xlu0 %v602_v40 }
 0x79d   :  { %v601_v43 = vpop.xlane.xlu0 %600 }
 0x79e   :  { %v605_v44 = vmul.f32 0.03125, %v601_v43 }
 0x7a0   :  { %v607_v45 = vadd.f32 1e-05, %v605_v44 }
 0x7a1   :  { %v604_v46 = vpop.xlane.xlu0 %603 }
 0x7a2   :  { %1033 = vrsqrt.f32 %v607_v45  ;;  %v606_v50 = vmul.f32 0.03125, %v604_v46 }
 0x7a4   :  { %v608_v51 = vadd.f32 1e-05, %v606_v50 }
 0x7a6   :  { %1035 = vrsqrt.f32 %v608_v51 }
 0x7ac   :  { %v1034_v53 = vpop.eup %1033 }
 0x7ad   :  { %v611_v54 = vmul.f32 %v1034_v53, %v595_v35 }
 0x7af   :  { %v619_v57 = vmul.f32 %v865_v55, %v611_v54 }
 0x7b0   :  { %v1036_v56 = vpop.eup %1035 }
 0x7b1   :  { %v612_v58 = vmul.f32 %v1036_v56, %v596_v38  ;;  %v627_v62 = vadd.f32 %v866_v59, %v619_v57 }
 0x7b3   :  { %v620_v60 = vmul.f32 %v865_v55, %v612_v58 }
 0x7b5   :  { %v628_v63 = vadd.f32 %v866_v59, %v620_v60 }
 0x7b7   :  { %v629_v2 = vpack.c.bf16 %v628_v63, %v627_v62 }
 0x7b9   :  { %951 = vmatmul.mubr.msk.bf16.vlgmr.msra.gmra.mrb[16].mxu0 %vm56_vm0, %v629_v2 }
 0x88c   :  { %v690_v12 = vpop.f32.mrb[16].mxu0 }
 0x88d   :  { %v691_v13 = vadd.f32 %v867_v11, %v690_v12  ;;  %v952_v14 = vpop.f32.mrb[17].mxu0 }
 0x88e   :  { %v693_v47 = vpop.f32.mrb[18].mxu0 }
 0x88f   :  { %v871_v16 = vmul.f32 -1.702, %v691_v13  ;;  %v694_v52 = vadd.f32 %v867_v11, %v693_v47  ;;  %v953_v17 = vpop.f32.mrb[19].mxu0 }
 0x891   :  { %v701_v18 = vmul.f32 1.442695, %v871_v16  ;;  %v872_v19 = vmul.f32 -1.702, %v694_v52 }
 0x893   :  { %1037 = vpow2.f32 %v701_v18  ;;  %v703_v15 = vmul.f32 1.442695, %v872_v19 }
 0x895   :  { %1039 = vpow2.f32 %v703_v15 }
 0x89d   :  { %v1038_v20 = vpop.eup %1037 }
 0x89e   :  { %v705_v21 = vadd.f32 1.0, %v1038_v20 }
 0x89f   :  { %v1040_v22 = vpop.eup %1039 }
 0x8a0   :  { %1041 = vrcp.f32 %v705_v21  ;;  %v706_v23 = vadd.f32 1.0, %v1040_v22 }
 0x8a2   :  { %1043 = vrcp.f32 %v706_v23 }
 0x8aa   :  { %v1042_v24 = vpop.eup %1041 }
 0x8ab   :  { %v711_v49 = vmul.f32 %v1042_v24, %v691_v13 }
 0x8ac   :  { %v1044_v48 = vpop.eup %1043 }
 0x8ad   :  { %v712_v25 = vmul.f32 %v1044_v48, %v694_v52 }
 0x8af   :  { %v713_v26 = vpack.c.bf16 %v712_v25, %v711_v49 }
 0x8b1   :  { %971 = vmatmul.mubr.bf16.vlgmr.msra.gmra.mrb[8].mxu1 %v713_v26 }
 0x984   :  { %v819_v29 = vpop.f32.mrb[8].mxu1 }
 0x985   :  { %v820_v30 = vadd.f32 %v873_v27, %v819_v29  ;;  %v972_v32 = vpop.f32.mrb[9].mxu1 }
 0x986   :  { %v822_v33 = vpop.f32.mrb[10].mxu1 }
 0x987   :  { %v826_v34 = vadd.f32 %v820_v30, %v1291_v28  ;;  %v823_v61 = vadd.f32 %v873_v27, %v822_v33  ;;  %v973_v35 = vpop.f32.mrb[11].mxu1 }
 0x989   :  { %828 = vst.msk [vmem:[#allocation2] sm:$0xff] %vm56_vm0, %v826_v34  ;;  %v827_v36 = vadd.f32 %v823_v61, %v1294_v31 }
 0x98b   :  { %829 = vst.msk [vmem:[#allocation2 + $0x8] sm:$0xff] %vm56_vm0, %v827_v36 }
 0x98c   :  { %1056 = shalt.err (!%p1053_p4)
}
 0x98d   :  { %s1057_s24 = scalar_lea.hbm %s1386_s15, 256 }
 0x98e   :  { %p1058_p5 = scmp.ne.s32.totalorder %s1386_s15, %s1057_s24  ;;  %p1061_p6 = scmp.lt.u32.totalorder %s1057_s24, %s1386_s15 }
 0x990   :  { %p1063_p7 = pnand %p1061_p6, %p1058_p5 }
 0x992   :  { %1066 = shalt.err (!%p1063_p7)
}
 0x993   :  { %s1075_s27 = smov 128   ;;  %s1076_s28 = smov 8  }
 0x994   :  { %841 = dma.vmem_to_hbm [thread:$0]  %s836_s8, 256, %s1386_s15, [#allocation3], %s1075_s27, %s1075_s27, %s1076_s28  }
 0x995   :  { %1067 = dma.done.wait [#allocation3], 256  }
 0x996   :  { %1068 = vsyncadd [#allocation3], 4294967040 }
 0x997   :  { %845 = vsyncpa [#allocation3], 1 }

</bundles_post_ra>
